<compile_context>
chip_gen: v7x
topology: tpu7x:2x2x1
jax: 0.10.0
libtpu: 0.0.40
codegen_flags: <defaults>
</compile_context>

<pallas_src>
import functools

import jax
import jax.numpy as jnp
from jax import lax
from jax.experimental import pallas as pl
from jax.experimental.pallas import tpu as pltpu


def _round_up(n, m):
    return ((n + m - 1) // m) * m


def _softplus(v):
    # Numerically stable softplus: max(v, 0) + log(1 + exp(-|v|)).
    # Written with log(1 + y) (y in (0, 1]) to avoid relying on a log1p lowering.
    return jnp.maximum(v, 0.0) + jnp.log(1.0 + jnp.exp(-jnp.abs(v)))


def barrier_kernel(x_ref,
                   w0_ref, b0_ref,
                   w1_ref, b1_ref,
                   w2_ref, b2_ref,
                   w3_ref, b3_ref,
                   out_ref, *, compute_dtype):
    f32 = jnp.float32
    x = x_ref[...]                                # (TB, S) batch-major tile

    # --- Layer 0: Linear(S -> H) on the MXU as einsum('hs,bs->hb').
    # Contracting the rhs on its minor dim avoids any transpose of the
    # activations and directly yields the feature-major (H, TB) layout.
    z = lax.dot_general(w0_ref[...], x, (((1,), (1,)), ((), ())),
                        preferred_element_type=f32) + b0_ref[...]
    h = _softplus(z.astype(compute_dtype))

    # --- Layers 1, 2: HxH matmuls on the MXU, f32 accumulation.
    z = jnp.dot(w1_ref[...], h, preferred_element_type=f32) + b1_ref[...]
    h = _softplus(z.astype(compute_dtype))
    z = jnp.dot(w2_ref[...], h, preferred_element_type=f32) + b2_ref[...]
    h = _softplus(z.astype(compute_dtype))

    # --- Layer 3: Linear(H -> 1).  Elementwise multiply + sublane reduce gives
    # the lane-dense (1, TB) row; b3 is an SMEM scalar.
    z = jnp.sum(h * w3_ref[...], axis=0, keepdims=True) + b3_ref[0, 0]

    # Sigmoid via a single EUP op: sigmoid(z) = 0.5 * tanh(z / 2) + 0.5.
    out_ref[...] = (0.5 * jnp.tanh(0.5 * z) + 0.5).astype(out_ref.dtype)


def barrier_nn_forward(x, params, *, block_batch=8192,
                       compute_dtype=jnp.float32):
    """x: (B, S) float32.  params in PyTorch layout: wK (out, in), bK (out, 1)."""
    B, S = x.shape
    H = params["w1"].shape[0]
    assert block_batch % 128 == 0

    # Batch tile (lane axis of the feature-major activations).
    TB = min(block_batch, _round_up(B, 128))
    if B > 128:
        # Keep the grid >= 2 blocks so dimension_semantics=("parallel",) can
        # shard the batch axis across both TensorCores on v7x.
        TB = min(TB, _round_up(pl.cdiv(B, 2), 128))
    if TB >= B:
        TB = B            # single full-array block: no 128-alignment required
    grid = (pl.cdiv(B, TB),)

    cd = jnp.dtype(compute_dtype)
    x = x.astype(jnp.float32)
    w0 = params["w0"].astype(jnp.float32)           # layer-0 kept in f32
    b0 = params["b0"].astype(jnp.float32)
    w1 = params["w1"].astype(cd)
    b1 = params["b1"].astype(jnp.float32)
    w2 = params["w2"].astype(cd)
    b2 = params["b2"].astype(jnp.float32)
    w3c = params["w3"].T.astype(cd)                 # (H, 1) column
    b3 = params["b3"].reshape(1, 1).astype(jnp.float32)

    def const_spec(a):
        # Whole array, same block every grid step -> stays VMEM-resident.
        return pl.BlockSpec(a.shape, lambda i: (0, 0))

    param_count = (w0.size + b0.size + w1.size + b1.size +
                   w2.size + b2.size + w3c.size + b3.size)
    cost = pl.CostEstimate(
        flops=2 * B * (S * H + 2 * H * H + H),
        transcendentals=B * (6 * H + 1),
        bytes_accessed=4 * (B * (S + 1) + param_count),
    )

    kernel = functools.partial(barrier_kernel, compute_dtype=cd)

    out_row = pl.pallas_call(
        kernel,
        out_shape=jax.ShapeDtypeStruct((1, B), jnp.float32),
        grid=grid,
        in_specs=[
            pl.BlockSpec((TB, S), lambda i: (i, 0)),       # batch-major x tile
            const_spec(w0), const_spec(b0),
            const_spec(w1), const_spec(b1),
            const_spec(w2), const_spec(b2),
            const_spec(w3c),
            pl.BlockSpec(memory_space=pltpu.MemorySpace.SMEM),   # b3 scalar
        ],
        out_specs=pl.BlockSpec((1, TB), lambda i: (0, i)),  # lane-dense output
        compiler_params=pltpu.CompilerParams(
            dimension_semantics=("parallel",),              # megacore on v7x
            vmem_limit_bytes=32 * 1024 * 1024,              # safe on all gens
        ),
        cost_estimate=cost,
    )(x, w0, b0, w1, b1, w2, b2, w3c, b3)

    return out_row[0].reshape(B, 1)


def init_params(key, state_size, hidden_size):
    """PyTorch-layout params: wK (out, in), bK (out, 1).

    Kaiming-normal (fan_in) for the first three weights; PyTorch Linear default
    (uniform +/- 1/sqrt(fan_in)) for biases and the last weight.
    """
    ks = jax.random.split(key, 8)
    dims = [(hidden_size, state_size),
            (hidden_size, hidden_size),
            (hidden_size, hidden_size),
            (1, hidden_size)]
    params = {}
    for i, (fan_out, fan_in) in enumerate(dims):
        if i < 3:
            std = (2.0 / fan_in) ** 0.5
            w = std * jax.random.normal(ks[2 * i], (fan_out, fan_in), jnp.float32)
        else:
            bound = 1.0 / (fan_in ** 0.5)
            w = jax.random.uniform(ks[2 * i], (fan_out, fan_in), jnp.float32,
                                   -bound, bound)
        bound = 1.0 / (fan_in ** 0.5)
        b = jax.random.uniform(ks[2 * i + 1], (fan_out, 1), jnp.float32,
                               -bound, bound)
        params[f"w{i}"] = w
        params[f"b{i}"] = b
    return params


def reference_forward(x, params):
    """Pure-JAX reference in batch-major layout, full f32 matmul precision."""
    hi = jax.lax.Precision.HIGHEST
    h = x
    for i in range(3):
        h = jax.nn.softplus(
            jnp.dot(h, params[f"w{i}"].T, precision=hi) + params[f"b{i}"].T)
    z = jnp.dot(h, params["w3"].T, precision=hi) + params["b3"].T
    return jax.nn.sigmoid(z)


if __name__ == "__main__":
    state_size = 4     # cartpole state
    hidden_size = 32
    batch = 8

    key = jax.random.PRNGKey(0)
    k_params, k_x, k_x2 = jax.random.split(key, 3)
    params = init_params(k_params, state_size, hidden_size)

    # f32 path.  Tolerance note: the MXU's default f32 matmul may use
    # bf16-pass arithmetic depending on backend defaults, so compare at 5e-3
    # (structural bugs would produce O(0.1) errors).
    TOL_F32 = 5e-3

    x = jax.random.normal(k_x, (batch, state_size), jnp.float32)
    out = jax.block_until_ready(barrier_nn_forward(x, params))
    ref = jax.block_until_ready(reference_forward(x, params))
    assert out.shape == (batch, 1)
    assert bool(jnp.all(jnp.isfinite(out)))        # after slicing to :B
    assert jnp.allclose(out, ref, atol=TOL_F32), float(jnp.max(jnp.abs(out - ref)))

    # Multi-block grid (megacore split) + clipped partial last block.
    x2 = jax.random.normal(k_x2, (300, state_size), jnp.float32)
    out2 = jax.block_until_ready(barrier_nn_forward(x2, params))
    ref2 = jax.block_until_ready(reference_forward(x2, params))
    assert out2.shape == (300, 1)
    assert bool(jnp.all(jnp.isfinite(out2)))
    assert jnp.allclose(out2, ref2, atol=TOL_F32), float(jnp.max(jnp.abs(out2 - ref2)))

    # bf16 fast path (intended for v6e/v7x; functionally correct everywhere).
    out3 = jax.block_until_ready(
        barrier_nn_forward(x2, params, compute_dtype=jnp.bfloat16))
    assert out3.shape == (300, 1)
    assert bool(jnp.all(jnp.isfinite(out3)))
    assert jnp.allclose(out3, ref2, atol=3e-2), float(jnp.max(jnp.abs(out3 - ref2)))

    print("KERNEL_OK")
</pallas_src>

<mosaic_0001>
module attributes {stable_mosaic.version = 11 : i64} {
  func.func @barrier_kernel(%arg0: i32, %arg1: memref<8x4xf32, #tpu.memory_space<vmem>>, %arg2: memref<32x4xf32, #tpu.memory_space<vmem>>, %arg3: memref<32x1xf32, #tpu.memory_space<vmem>>, %arg4: memref<32x32xf32, #tpu.memory_space<vmem>>, %arg5: memref<32x1xf32, #tpu.memory_space<vmem>>, %arg6: memref<32x32xf32, #tpu.memory_space<vmem>>, %arg7: memref<32x1xf32, #tpu.memory_space<vmem>>, %arg8: memref<32x1xf32, #tpu.memory_space<vmem>>, %arg9: memref<1x1xf32, #tpu.memory_space<smem>>, %arg10: memref<1x8xf32, #tpu.memory_space<vmem>>) attributes {dimension_semantics = [#tpu.dimension_semantics<parallel>], iteration_bounds = array<i64: 1>, scalar_prefetch = 0 : i64, scratch_operands = 0 : i64, tpu.core_type = #tpu.core_type<tc>, window_params = [{transform_indices = @transform_0, window_bounds = array<i64: 8, 4>}, {pipeline_mode = #tpu.pipeline_mode<synchronous>, transform_indices = @transform_1, window_bounds = array<i64: 32, 4>}, {pipeline_mode = #tpu.pipeline_mode<synchronous>, transform_indices = @transform_2, window_bounds = array<i64: 32, 1>}, {pipeline_mode = #tpu.pipeline_mode<synchronous>, transform_indices = @transform_3, window_bounds = array<i64: 32, 32>}, {pipeline_mode = #tpu.pipeline_mode<synchronous>, transform_indices = @transform_4, window_bounds = array<i64: 32, 1>}, {pipeline_mode = #tpu.pipeline_mode<synchronous>, transform_indices = @transform_5, window_bounds = array<i64: 32, 32>}, {pipeline_mode = #tpu.pipeline_mode<synchronous>, transform_indices = @transform_6, window_bounds = array<i64: 32, 1>}, {pipeline_mode = #tpu.pipeline_mode<synchronous>, transform_indices = @transform_7, window_bounds = array<i64: 32, 1>}, {transform_indices = @transform_8, window_bounds = array<i64: 1, 1>}, {transform_indices = @transform_9, window_bounds = array<i64: 1, 8>}]} {
    %c0 = arith.constant 0 : index
    %c0_0 = arith.constant 0 : index
    %0 = vector.load %arg1[%c0, %c0_0] : memref<8x4xf32, #tpu.memory_space<vmem>>, vector<8x4xf32>
    %c0_1 = arith.constant 0 : index
    %c0_2 = arith.constant 0 : index
    %1 = vector.load %arg2[%c0_1, %c0_2] : memref<32x4xf32, #tpu.memory_space<vmem>>, vector<32x4xf32>
    %cst = arith.constant dense<0.000000e+00> : vector<32x8xf32>
    %2 = tpu.matmul %1, %0, %cst {dimension_numbers = #tpu.dot_dimension_numbers<[1], [1], [0], [0], [0, 0, 1, 0], [], []>} : vector<32x4xf32>, vector<8x4xf32>, vector<32x8xf32> -> vector<32x8xf32>
    %c0_3 = arith.constant 0 : index
    %c0_4 = arith.constant 0 : index
    %3 = vector.load %arg3[%c0_3, %c0_4] : memref<32x1xf32, #tpu.memory_space<vmem>>, vector<32x1xf32>
    %4 = vector.broadcast %3 : vector<32x1xf32> to vector<32x8xf32>
    %5 = arith.addf %2, %4 : vector<32x8xf32>
    %cst_5 = arith.constant 0.000000e+00 : f32
    %6 = vector.broadcast %cst_5 : f32 to vector<32x8xf32>
    %7 = arith.maximumf %5, %6 : vector<32x8xf32>
    %8 = math.absf %5 : vector<32x8xf32>
    %cst_6 = arith.constant 0.000000e+00 : f32
    %9 = vector.broadcast %cst_6 : f32 to vector<32x8xf32>
    %10 = arith.subf %9, %8 : vector<32x8xf32>
    %11 = math.exp %10 : vector<32x8xf32>
    %cst_7 = arith.constant 1.000000e+00 : f32
    %12 = vector.broadcast %cst_7 : f32 to vector<32x8xf32>
    %13 = arith.addf %12, %11 : vector<32x8xf32>
    %14 = math.log %13 : vector<32x8xf32>
    %15 = arith.addf %7, %14 : vector<32x8xf32>
    %c0_8 = arith.constant 0 : index
    %c0_9 = arith.constant 0 : index
    %16 = vector.load %arg4[%c0_8, %c0_9] : memref<32x32xf32, #tpu.memory_space<vmem>>, vector<32x32xf32>
    %cst_10 = arith.constant dense<0.000000e+00> : vector<32x8xf32>
    %17 = tpu.matmul %16, %15, %cst_10 {dimension_numbers = #tpu.dot_dimension_numbers<[1], [0], [0], [1], [0, 0, 1, 1], [], []>} : vector<32x32xf32>, vector<32x8xf32>, vector<32x8xf32> -> vector<32x8xf32>
    %c0_11 = arith.constant 0 : index
    %c0_12 = arith.constant 0 : index
    %18 = vector.load %arg5[%c0_11, %c0_12] : memref<32x1xf32, #tpu.memory_space<vmem>>, vector<32x1xf32>
    %19 = vector.broadcast %18 : vector<32x1xf32> to vector<32x8xf32>
    %20 = arith.addf %17, %19 : vector<32x8xf32>
    %cst_13 = arith.constant 0.000000e+00 : f32
    %21 = vector.broadcast %cst_13 : f32 to vector<32x8xf32>
    %22 = arith.maximumf %20, %21 : vector<32x8xf32>
    %23 = math.absf %20 : vector<32x8xf32>
    %cst_14 = arith.constant 0.000000e+00 : f32
    %24 = vector.broadcast %cst_14 : f32 to vector<32x8xf32>
    %25 = arith.subf %24, %23 : vector<32x8xf32>
    %26 = math.exp %25 : vector<32x8xf32>
    %cst_15 = arith.constant 1.000000e+00 : f32
    %27 = vector.broadcast %cst_15 : f32 to vector<32x8xf32>
    %28 = arith.addf %27, %26 : vector<32x8xf32>
    %29 = math.log %28 : vector<32x8xf32>
    %30 = arith.addf %22, %29 : vector<32x8xf32>
    %c0_16 = arith.constant 0 : index
    %c0_17 = arith.constant 0 : index
    %31 = vector.load %arg6[%c0_16, %c0_17] : memref<32x32xf32, #tpu.memory_space<vmem>>, vector<32x32xf32>
    %cst_18 = arith.constant dense<0.000000e+00> : vector<32x8xf32>
    %32 = tpu.matmul %31, %30, %cst_18 {dimension_numbers = #tpu.dot_dimension_numbers<[1], [0], [0], [1], [0, 0, 1, 1], [], []>} : vector<32x32xf32>, vector<32x8xf32>, vector<32x8xf32> -> vector<32x8xf32>
    %c0_19 = arith.constant 0 : index
    %c0_20 = arith.constant 0 : index
    %33 = vector.load %arg7[%c0_19, %c0_20] : memref<32x1xf32, #tpu.memory_space<vmem>>, vector<32x1xf32>
    %34 = vector.broadcast %33 : vector<32x1xf32> to vector<32x8xf32>
    %35 = arith.addf %32, %34 : vector<32x8xf32>
    %cst_21 = arith.constant 0.000000e+00 : f32
    %36 = vector.broadcast %cst_21 : f32 to vector<32x8xf32>
    %37 = arith.maximumf %35, %36 : vector<32x8xf32>
    %38 = math.absf %35 : vector<32x8xf32>
    %cst_22 = arith.constant 0.000000e+00 : f32
    %39 = vector.broadcast %cst_22 : f32 to vector<32x8xf32>
    %40 = arith.subf %39, %38 : vector<32x8xf32>
    %41 = math.exp %40 : vector<32x8xf32>
    %cst_23 = arith.constant 1.000000e+00 : f32
    %42 = vector.broadcast %cst_23 : f32 to vector<32x8xf32>
    %43 = arith.addf %42, %41 : vector<32x8xf32>
    %44 = math.log %43 : vector<32x8xf32>
    %45 = arith.addf %37, %44 : vector<32x8xf32>
    %c0_24 = arith.constant 0 : index
    %c0_25 = arith.constant 0 : index
    %46 = vector.load %arg8[%c0_24, %c0_25] : memref<32x1xf32, #tpu.memory_space<vmem>>, vector<32x1xf32>
    %47 = vector.broadcast %46 : vector<32x1xf32> to vector<32x8xf32>
    %48 = arith.mulf %45, %47 : vector<32x8xf32>
    %cst_26 = arith.constant dense<0.000000e+00> : vector<8xf32>
    %49 = vector.multi_reduction <add>, %48, %cst_26 [0] : vector<32x8xf32> to vector<8xf32>
    %50 = vector.shape_cast %49 : vector<8xf32> to vector<1x8xf32>
    %c0_27 = arith.constant 0 : index
    %c0_28 = arith.constant 0 : index
    %51 = memref.load %arg9[%c0_27, %c0_28] : memref<1x1xf32, #tpu.memory_space<smem>>
    %52 = vector.broadcast %51 : f32 to vector<1x8xf32>
    %53 = arith.addf %50, %52 : vector<1x8xf32>
    %cst_29 = arith.constant 5.000000e-01 : f32
    %54 = vector.broadcast %cst_29 : f32 to vector<1x8xf32>
    %55 = arith.mulf %54, %53 : vector<1x8xf32>
    %56 = math.tanh %55 : vector<1x8xf32>
    %cst_30 = arith.constant 5.000000e-01 : f32
    %57 = vector.broadcast %cst_30 : f32 to vector<1x8xf32>
    %58 = arith.mulf %57, %56 : vector<1x8xf32>
    %cst_31 = arith.constant 5.000000e-01 : f32
    %59 = vector.broadcast %cst_31 : f32 to vector<1x8xf32>
    %60 = arith.addf %58, %59 : vector<1x8xf32>
    %c0_32 = arith.constant 0 : index
    %c0_33 = arith.constant 0 : index
    %61 = vector.load %arg10[%c0_32, %c0_33] : memref<1x8xf32, #tpu.memory_space<vmem>>, vector<1x8xf32>
    tpu.vector_store %arg10[%c0_32, %c0_33], %60 {strides = array<i32>} : memref<1x8xf32, #tpu.memory_space<vmem>>, vector<1x8xf32>,
    return
  }
  func.func @transform_0(%arg0: i32) -> (i32, i32) {
    %c0_i32 = arith.constant 0 : i32
    %c0_i32_0 = arith.constant 0 : i32
    return %arg0, %c0_i32 : i32, i32
  }
  func.func @transform_1(%arg0: i32) -> (i32, i32) {
    %c0_i32 = arith.constant 0 : i32
    %c0_i32_0 = arith.constant 0 : i32
    %c0_i32_1 = arith.constant 0 : i32
    return %c0_i32, %c0_i32_0 : i32, i32
  }
  func.func @transform_2(%arg0: i32) -> (i32, i32) {
    %c0_i32 = arith.constant 0 : i32
    %c0_i32_0 = arith.constant 0 : i32
    %c0_i32_1 = arith.constant 0 : i32
    return %c0_i32, %c0_i32_0 : i32, i32
  }
  func.func @transform_3(%arg0: i32) -> (i32, i32) {
    %c0_i32 = arith.constant 0 : i32
    %c0_i32_0 = arith.constant 0 : i32
    %c0_i32_1 = arith.constant 0 : i32
    return %c0_i32, %c0_i32_0 : i32, i32
  }
  func.func @transform_4(%arg0: i32) -> (i32, i32) {
    %c0_i32 = arith.constant 0 : i32
    %c0_i32_0 = arith.constant 0 : i32
    %c0_i32_1 = arith.constant 0 : i32
    return %c0_i32, %c0_i32_0 : i32, i32
  }
  func.func @transform_5(%arg0: i32) -> (i32, i32) {
    %c0_i32 = arith.constant 0 : i32
    %c0_i32_0 = arith.constant 0 : i32
    %c0_i32_1 = arith.constant 0 : i32
    return %c0_i32, %c0_i32_0 : i32, i32
  }
  func.func @transform_6(%arg0: i32) -> (i32, i32) {
    %c0_i32 = arith.constant 0 : i32
    %c0_i32_0 = arith.constant 0 : i32
    %c0_i32_1 = arith.constant 0 : i32
    return %c0_i32, %c0_i32_0 : i32, i32
  }
  func.func @transform_7(%arg0: i32) -> (i32, i32) {
    %c0_i32 = arith.constant 0 : i32
    %c0_i32_0 = arith.constant 0 : i32
    %c0_i32_1 = arith.constant 0 : i32
    return %c0_i32, %c0_i32_0 : i32, i32
  }
  func.func @transform_8(%arg0: i32) -> (i32, i32) {
    %c0_i32 = arith.constant 0 : i32
    %c0_i32_0 = arith.constant 0 : i32
    %c0_i32_1 = arith.constant 0 : i32
    return %c0_i32, %c0_i32_0 : i32, i32
  }
  func.func @transform_9(%arg0: i32) -> (i32, i32) {
    %c0_i32 = arith.constant 0 : i32
    %c0_i32_0 = arith.constant 0 : i32
    return %c0_i32, %arg0 : i32, i32
  }
}

</mosaic_0001>

<bundles_post_ra>
// kernel: tpu_custom_call.1
= control target key start
LH: loop header
LB: loop body
LE: loop exit
PB: predicated region body
PF: predicated region fallthrough
CT: control target
= control target key end

     0   :  { %vm63_vm0 = vcmask 31744   ;;  %v752_v4 = vmov 0   ;;  %s924_s0 = inlined_call_operand.vmem [shape: f32[8,4], index: 0, kind: input, shape index: {}]   ;;  %s925_s1 = inlined_call_operand.vmem [shape: f32[32,4], index: 1, kind: input, shape index: {}]   ;;  %s926_s2 = inlined_call_operand.vmem [shape: f32[32,1], index: 2, kind: input, shape index: {}]   ;;  %s927_s3 = inlined_call_operand.vmem [shape: f32[32,32], index: 3, kind: input, shape index: {}]   ;;  %s928_s4 = inlined_call_operand.vmem [shape: f32[32,1], index: 4, kind: input, shape index: {}]   ;;  %s929_s5 = inlined_call_operand.vmem [shape: f32[32,32], index: 5, kind: input, shape index: {}]   ;;  %s930_s6 = inlined_call_operand.vmem [shape: f32[32,1], index: 6, kind: input, shape index: {}]   ;;  %s931_s7 = inlined_call_operand.vmem [shape: f32[32,1], index: 7, kind: input, shape index: {}]   ;;  %s932_s8 = inlined_call_operand.<no memory space> [shape: f32[1,1], index: 8, kind: input, shape index: {}]   ;;  %s933_s9 = inlined_call_operand.hbm [shape: f32[1,8], index: 9, kind: output, shape index: {}]  }
   0x1   :  { %v34_v0 = vld [vmem:[%s924_s0] sm:$0xff]  ;;  %v36_v3 = vld [vmem:[%s925_s1 + $0x8] sm:$0xff]  ;;  %676 = vset.pattern.permute.xlu0 %v752_v4  ;;  %v41_v5 = vld [vmem:[%s926_s2 + $0x10] sm:$0xff]  ;;  %677 = vset.pattern.permute.xlu1 %v752_v4 }
   0x2   :  { %v35_v1 = vld [vmem:[%s925_s1] sm:$0xff]  ;;  %622 = vmatprep.subr.msk.mxu0 %vm63_vm0, %v34_v0  ;;  %v37_v6 = vld [vmem:[%s925_s1 + $0x10] sm:$0xff]  ;;  %55 = vperm.xlu1 %677, %v41_v5   ;;  %v40_v7 = vld [vmem:[%s926_s2 + $0x8] sm:$0xff] }
   0x3   :  { %624 = vmatprep.mubr.msk.f32.mxu0 %vm63_vm0, %v35_v1  ;;  %v39_v2 = vld [vmem:[%s926_s2] sm:$0xff]  ;;  %623 = vmatpush3.xpose.msk.msra.mxu0 %vm63_vm0, %v34_v0  ;;  %v42_v8 = vld [vmem:[%s926_s2 + $0x18] sm:$0xff] }
   0x4   :  { %45 = vperm.xlu0 %676, %v39_v2   ;;  %v38_v9 = vld [vmem:[%s925_s1 + $0x18] sm:$0xff] }
   0x6   :  { %625 = vmatmul.mubr.msk.f32.vlgmr.msra.gmra.mrb[0].mxu0 %vm63_vm0, %v36_v3 }
   0x7   :  { %627 = vmatprep.mubr.msk.f32.mxu0 %vm63_vm0, %v37_v6 }
   0x8   :  { %50 = vperm.xlu0 %676, %v40_v7  }
   0x9   :  { %15 = vsyncpa [#allocation4], 0  ;;  %60 = vperm.xlu1 %677, %v42_v8   ;;  %v204_v10 = vld [vmem:[%s928_s4] sm:$0xff]  ;;  %v205_v11 = vld [vmem:[%s928_s4 + $0x8] sm:$0xff]  ;;  %vm228_vm1 = vcmask 261120   ;;  %vm551_vm2 = vcmask 64512  }
   0xa   :  { %628 = vmatmul.mubr.msk.f32.gmra.mrb[2].mxu0 %vm63_vm0, %v38_v9  ;;  %v206_v12 = vld [vmem:[%s928_s4 + $0x10] sm:$0xff]  ;;  %v207_v13 = vld [vmem:[%s928_s4 + $0x18] sm:$0xff]  ;;  %v366_v14 = vld [vmem:[%s930_s6] sm:$0xff]  ;;  %s753_s16 = smov [#allocation3]   ;;  %vm572_vm3 = vcmask 57344  }
   0xb   :  { %v367_v15 = vld [vmem:[%s930_s6 + $0x8] sm:$0xff]  ;;  %v368_v16 = vld [vmem:[%s930_s6 + $0x10] sm:$0xff]  ;;  %v369_v17 = vld [vmem:[%s930_s6 + $0x18] sm:$0xff]  ;;  %s580_s0 = sshll.u32 %s753_s16, 4  ;;  %s581_s0 = int_to_ptr.vmem [resolvable:$true] %s580_s0 }
   0xc   :  { %210 = vperm.xlu0 %676, %v204_v10   ;;  %v523_v18 = vld [vmem:[%s931_s7] sm:$0xff]  ;;  %v524_v19 = vld [vmem:[%s931_s7 + $0x8] sm:$0xff]  ;;  %v525_v20 = vld [vmem:[%s931_s7 + $0x10] sm:$0xff]  ;;  %s728_s17 = scalar_lea.vmem %s581_s0, 16  ;;  %s732_s4 = scalar_lea.vmem %s581_s0, 32 }
   0xd   :  { %215 = vperm.xlu1 %677, %v205_v11   ;;  %v526_v21 = vld [vmem:[%s931_s7 + $0x18] sm:$0xff]  ;;  %v200_v22 = vld [vmem:[%s927_s3] sm:$0xff]  ;;  %v201_v9 = vld [vmem:[%s927_s3 + $0x8] sm:$0xff]  ;;  %p729_p0 = scmp.ne.s32.totalorder %s581_s0, %s728_s17  ;;  %p733_p1 = scmp.lt.s32.totalorder %s581_s0, %s581_s0 }
   0xe   :  { %638 = vmatprep.mubr.msk.f32.mxu1 %vm228_vm1, %v200_v22  ;;  %v202_v10 = vld [vmem:[%s927_s3 + $0x10] sm:$0xff]  ;;  %v203_v11 = vld [vmem:[%s927_s3 + $0x18] sm:$0xff]  ;;  %p734_p2 = scmp.lt.s32.totalorder %s732_s4, %s728_s17 }
  0x10   :  { %220 = vperm.xlu0 %676, %v206_v12   ;;  %v362_v12 = vld [vmem:[%s929_s5] sm:$0xff]  ;;  %p735_p3 = por %p734_p2, %p733_p1 }
  0x11   :  { %225 = vperm.xlu1 %677, %v207_v13   ;;  %652 = vmatprep.mubr.msk.f32.mxu0 %vm228_vm1, %v362_v12 }
  0x12   :  { %p736_p4 = pnand %p735_p3, %p729_p0 }
  0x14   :  { %372 = vperm.xlu0 %676, %v366_v14  }
  0x15   :  { %377 = vperm.xlu1 %677, %v367_v15  }
  0x18   :  { %382 = vperm.xlu0 %676, %v368_v16  }
  0x19   :  { %387 = vperm.xlu1 %677, %v369_v17  }
  0x1c   :  { %529 = vperm.xlu0 %676, %v523_v18  }
  0x1d   :  { %534 = vperm.xlu1 %677, %v524_v19  }
  0x20   :  { %539 = vperm.xlu0 %676, %v525_v20  }
  0x21   :  { %544 = vperm.xlu1 %677, %v526_v21  }
  0x81   :  { %v56_v24 = vpop.permute.xlu1 %55 }
  0x83   :  { %v46_v23 = vpop.permute.xlu0 %45 }
  0x87   :  { %v51_v25 = vpop.permute.xlu0 %50 }
  0x88   :  { %v61_v31 = vpop.permute.xlu1 %60 }
  0x8b   :  { %v211_v14 = vpop.permute.xlu0 %210 }
  0x8c   :  { %v216_v13 = vpop.permute.xlu1 %215 }
  0x90   :  { %v226_v20 = vpop.permute.xlu1 %225 }
  0xd9   :  { %v626_v26 = vpop.f32.mrb[0].mxu0 }
  0xda   :  { %v151_v27 = vadd.f32 %v626_v26, %v51_v25  ;;  %v145_v28 = vpop.f32.mrb[1].mxu0 }
  0xdb   :  { %v146_v29 = vadd.f32 %v145_v28, %v46_v23  ;;  %v221_v23 = vpop.permute.xlu0 %220 }
  0xdc   :  { %v169_v30 = vand.u32 2147483647, %v151_v27  ;;  %v165_v57 = vmax.f32 %v151_v27, 0.0 }
  0xdd   :  { %v168_v32 = vand.u32 2147483647, %v146_v29  ;;  %v629_v33 = vpop.f32.mrb[2].mxu0  ;;  %v164_v59 = vmax.f32 %v146_v29, 0.0 }
  0xde   :  { %v173_v34 = vsub.f32 0.0, %v169_v30  ;;  %v161_v35 = vadd.f32 %v629_v33, %v61_v31  ;;  %v155_v36 = vpop.f32.mrb[3].mxu0 }
  0xdf   :  { %v172_v37 = vsub.f32 0.0, %v168_v32  ;;  %v156_v38 = vadd.f32 %v155_v36, %v56_v24 }
  0xe0   :  { %v178_v39 = vmul.f32 1.442695, %v173_v34  ;;  %v171_v40 = vand.u32 2147483647, %v161_v35  ;;  %v167_v1 = vmax.f32 %v161_v35, 0.0 }
  0xe1   :  { %v176_v41 = vmul.f32 1.442695, %v172_v37  ;;  %v170_v42 = vand.u32 2147483647, %v156_v38  ;;  %v166_v3 = vmax.f32 %v156_v38, 0.0 }
  0xe2   :  { %678 = vpow2.f32 %v178_v39  ;;  %v175_v43 = vsub.f32 0.0, %v171_v40 }
  0xe3   :  { %680 = vpow2.f32 %v176_v41  ;;  %v174_v44 = vsub.f32 0.0, %v170_v42 }
  0xe4   :  { %v182_v45 = vmul.f32 1.442695, %v175_v43 }
  0xe5   :  { %v180_v46 = vmul.f32 1.442695, %v174_v44 }
  0xe6   :  { %682 = vpow2.f32 %v182_v45 }
  0xe7   :  { %684 = vpow2.f32 %v180_v46 }
  0xec   :  { %v679_v47 = vpop.eup %678 }
  0xed   :  { %v681_v48 = vpop.eup %680  ;;  %v185_v49 = vadd.f32 1.0, %v679_v47 }
  0xee   :  { %v184_v50 = vadd.f32 1.0, %v681_v48 }
  0xef   :  { %686 = vlog2.f32 %v185_v49 }
  0xf0   :  { %v683_v51 = vpop.eup %682  ;;  %688 = vlog2.f32 %v184_v50 }
  0xf1   :  { %v685_v52 = vpop.eup %684  ;;  %v187_v53 = vadd.f32 1.0, %v683_v51 }
  0xf2   :  { %v186_v54 = vadd.f32 1.0, %v685_v52 }
  0xf3   :  { %690 = vlog2.f32 %v187_v53 }
  0xf4   :  { %692 = vlog2.f32 %v186_v54 }
  0xf9   :  { %v687_v55 = vpop.eup %686 }
  0xfa   :  { %v689_v56 = vpop.eup %688  ;;  %v191_v58 = vmul.f32 0.6931472, %v687_v55 }
  0xfb   :  { %v189_v60 = vmul.f32 0.6931472, %v689_v56 }
  0xfc   :  { %v197_v61 = vadd.f32 %v191_v58, %v165_v57 }
  0xfd   :  { %v691_v62 = vpop.eup %690  ;;  %v196_v63 = vadd.f32 %v189_v60, %v164_v59 }
  0xfe   :  { %v693_v0 = vpop.eup %692  ;;  %v195_v2 = vmul.f32 0.6931472, %v691_v62 }
  0xff   :  { %v193_v4 = vmul.f32 0.6931472, %v693_v0  ;;  %v658_v5 = vpack.c.bf16 %v197_v61, %v196_v63  ;;  %v363_v63 = vld [vmem:[%s929_s5 + $0x8] sm:$0xff]  ;;  %v364_v0 = vld [vmem:[%s929_s5 + $0x10] sm:$0xff] }
 0x100   :  { %v199_v6 = vadd.f32 %v195_v2, %v167_v1  ;;  %v365_v1 = vld [vmem:[%s929_s5 + $0x18] sm:$0xff]  ;;  %v378_v2 = vpop.permute.xlu1 %377 }
 0x101   :  { %v198_v7 = vadd.f32 %v193_v4, %v166_v3  ;;  %659 = vmatprep.subr.bf16.mxu1 %v658_v5  ;;  %v373_v3 = vpop.permute.xlu0 %372 }
 0x102   :  { %661 = vmatpush3.bf16.msra.mxu1 %v658_v5 }
 0x103   :  { %v662_v8 = vpack.c.bf16 %v199_v6, %v198_v7 }
 0x105   :  { %663 = vmatprep.subr.bf16.mxu1 %v662_v8  ;;  %v383_v12 = vpop.permute.xlu0 %382 }
 0x106   :  { %665 = vmatpush3.bf16.msra.mxu1 %v662_v8 }
 0x109   :  { %639 = vmatmul.mubr.msk.f32.vlgmr.msra.gmra.mrb[0].mxu1 %vm228_vm1, %v201_v9  ;;  %v388_v9 = vpop.permute.xlu1 %387 }
 0x10a   :  { %641 = vmatprep.mubr.msk.f32.mxu1 %vm228_vm1, %v202_v10 }
 0x10d   :  { %642 = vmatmul.mubr.msk.f32.gmra.mrb[2].mxu1 %vm228_vm1, %v203_v11 }
 0x1dc   :  { %v640_v15 = vpop.f32.mrb[0].mxu1 }
 0x1dd   :  { %v313_v16 = vadd.f32 %v640_v15, %v216_v13  ;;  %v307_v17 = vpop.f32.mrb[1].mxu1 }
 0x1de   :  { %v308_v18 = vadd.f32 %v307_v17, %v211_v14 }
 0x1df   :  { %v331_v19 = vand.u32 2147483647, %v313_v16  ;;  %v327_v47 = vmax.f32 %v313_v16, 0.0 }
 0x1e0   :  { %v330_v21 = vand.u32 2147483647, %v308_v18  ;;  %v643_v22 = vpop.f32.mrb[2].mxu1  ;;  %v326_v49 = vmax.f32 %v308_v18, 0.0 }
 0x1e1   :  { %v335_v24 = vsub.f32 0.0, %v331_v19  ;;  %v323_v25 = vadd.f32 %v643_v22, %v226_v20  ;;  %v317_v26 = vpop.f32.mrb[3].mxu1 }
 0x1e2   :  { %v334_v27 = vsub.f32 0.0, %v330_v21  ;;  %v318_v28 = vadd.f32 %v317_v26, %v221_v23 }
 0x1e3   :  { %v340_v29 = vmul.f32 1.442695, %v335_v24  ;;  %v333_v30 = vand.u32 2147483647, %v323_v25  ;;  %v329_v55 = vmax.f32 %v323_v25, 0.0 }
 0x1e4   :  { %v338_v31 = vmul.f32 1.442695, %v334_v27  ;;  %v332_v32 = vand.u32 2147483647, %v318_v28  ;;  %v328_v57 = vmax.f32 %v318_v28, 0.0 }
 0x1e5   :  { %694 = vpow2.f32 %v340_v29  ;;  %v337_v33 = vsub.f32 0.0, %v333_v30 }
 0x1e6   :  { %696 = vpow2.f32 %v338_v31  ;;  %v336_v34 = vsub.f32 0.0, %v332_v32 }
 0x1e7   :  { %v344_v35 = vmul.f32 1.442695, %v337_v33 }
 0x1e8   :  { %v342_v36 = vmul.f32 1.442695, %v336_v34 }
 0x1e9   :  { %698 = vpow2.f32 %v344_v35 }
 0x1ea   :  { %700 = vpow2.f32 %v342_v36 }
 0x1ef   :  { %v695_v37 = vpop.eup %694 }
 0x1f0   :  { %v697_v38 = vpop.eup %696  ;;  %v347_v39 = vadd.f32 1.0, %v695_v37 }
 0x1f1   :  { %v346_v40 = vadd.f32 1.0, %v697_v38 }
 0x1f2   :  { %702 = vlog2.f32 %v347_v39 }
 0x1f3   :  { %v699_v41 = vpop.eup %698  ;;  %704 = vlog2.f32 %v346_v40  ;;  %v530_v40 = vpop.permute.xlu0 %529 }
 0x1f4   :  { %v701_v42 = vpop.eup %700  ;;  %v349_v43 = vadd.f32 1.0, %v699_v41  ;;  %v535_v41 = vpop.permute.xlu1 %534 }
 0x1f5   :  { %v348_v44 = vadd.f32 1.0, %v701_v42 }
 0x1f6   :  { %706 = vlog2.f32 %v349_v43 }
 0x1f7   :  { %708 = vlog2.f32 %v348_v44 }
 0x1fc   :  { %v703_v45 = vpop.eup %702 }
 0x1fd   :  { %v705_v46 = vpop.eup %704  ;;  %v353_v48 = vmul.f32 0.6931472, %v703_v45 }
 0x1fe   :  { %v351_v50 = vmul.f32 0.6931472, %v705_v46 }
 0x1ff   :  { %v359_v51 = vadd.f32 %v353_v48, %v327_v47 }
 0x200   :  { %v707_v52 = vpop.eup %706  ;;  %v358_v53 = vadd.f32 %v351_v50, %v326_v49 }
 0x201   :  { %v709_v54 = vpop.eup %708  ;;  %v357_v56 = vmul.f32 0.6931472, %v707_v52 }
 0x202   :  { %v355_v58 = vmul.f32 0.6931472, %v709_v54  ;;  %v666_v59 = vpack.c.bf16 %v359_v51, %v358_v53 }
 0x203   :  { %v361_v60 = vadd.f32 %v357_v56, %v329_v55  ;;  %v540_v56 = vpop.permute.xlu0 %539 }
 0x204   :  { %v360_v61 = vadd.f32 %v355_v58, %v328_v57  ;;  %667 = vmatprep.subr.bf16.mxu0 %v666_v59  ;;  %v545_v57 = vpop.permute.xlu1 %544 }
 0x205   :  { %669 = vmatpush3.bf16.msra.mxu0 %v666_v59 }
 0x206   :  { %v670_v62 = vpack.c.bf16 %v361_v60, %v360_v61 }
 0x208   :  { %671 = vmatprep.subr.bf16.mxu0 %v670_v62 }
 0x209   :  { %673 = vmatpush3.bf16.msra.mxu0 %v670_v62 }
 0x20c   :  { %653 = vmatmul.mubr.msk.f32.vlgmr.msra.gmra.mrb[4].mxu0 %vm228_vm1, %v363_v63 }
 0x20d   :  { %655 = vmatprep.mubr.msk.f32.mxu0 %vm228_vm1, %v364_v0 }
 0x210   :  { %656 = vmatmul.mubr.msk.f32.gmra.mrb[6].mxu0 %vm228_vm1, %v365_v1 }
 0x2df   :  { %v654_v4 = vpop.f32.mrb[4].mxu0 }
 0x2e0   :  { %v474_v5 = vadd.f32 %v654_v4, %v378_v2  ;;  %v468_v6 = vpop.f32.mrb[5].mxu0 }
 0x2e1   :  { %v469_v7 = vadd.f32 %v468_v6, %v373_v3  ;;  %v566_v6 = vstv %s932_s8 }
 0x2e2   :  { %v492_v8 = vand.u32 2147483647, %v474_v5  ;;  %v488_v36 = vmax.f32 %v474_v5, 0.0 }
 0x2e3   :  { %v491_v10 = vand.u32 2147483647, %v469_v7  ;;  %v657_v11 = vpop.f32.mrb[6].mxu0  ;;  %v487_v38 = vmax.f32 %v469_v7, 0.0 }
 0x2e4   :  { %v496_v13 = vsub.f32 0.0, %v492_v8  ;;  %v484_v14 = vadd.f32 %v657_v11, %v388_v9  ;;  %v478_v15 = vpop.f32.mrb[7].mxu0 }
 0x2e5   :  { %v495_v16 = vsub.f32 0.0, %v491_v10  ;;  %v479_v17 = vadd.f32 %v478_v15, %v383_v12 }
 0x2e6   :  { %v501_v18 = vmul.f32 1.442695, %v496_v13  ;;  %v494_v19 = vand.u32 2147483647, %v484_v14  ;;  %v490_v47 = vmax.f32 %v484_v14, 0.0 }
 0x2e7   :  { %v499_v20 = vmul.f32 1.442695, %v495_v16  ;;  %v493_v21 = vand.u32 2147483647, %v479_v17  ;;  %v489_v50 = vmax.f32 %v479_v17, 0.0 }
 0x2e8   :  { %710 = vpow2.f32 %v501_v18  ;;  %v498_v22 = vsub.f32 0.0, %v494_v19 }
 0x2e9   :  { %712 = vpow2.f32 %v499_v20  ;;  %v497_v23 = vsub.f32 0.0, %v493_v21 }
 0x2ea   :  { %v505_v24 = vmul.f32 1.442695, %v498_v22 }
 0x2eb   :  { %v503_v25 = vmul.f32 1.442695, %v497_v23 }
 0x2ec   :  { %714 = vpow2.f32 %v505_v24 }
 0x2ed   :  { %716 = vpow2.f32 %v503_v25 }
 0x2f2   :  { %v711_v26 = vpop.eup %710 }
 0x2f3   :  { %v713_v27 = vpop.eup %712  ;;  %v508_v28 = vadd.f32 1.0, %v711_v26 }
 0x2f4   :  { %v507_v29 = vadd.f32 1.0, %v713_v27 }
 0x2f5   :  { %718 = vlog2.f32 %v508_v28 }
 0x2f6   :  { %v715_v30 = vpop.eup %714  ;;  %720 = vlog2.f32 %v507_v29 }
 0x2f7   :  { %v717_v31 = vpop.eup %716  ;;  %v510_v32 = vadd.f32 1.0, %v715_v30 }
 0x2f8   :  { %v509_v33 = vadd.f32 1.0, %v717_v31 }
 0x2f9   :  { %722 = vlog2.f32 %v510_v32 }
 0x2fa   :  { %724 = vlog2.f32 %v509_v33 }
 0x2ff   :  { %v719_v34 = vpop.eup %718 }
 0x300   :  { %v721_v35 = vpop.eup %720  ;;  %v514_v37 = vmul.f32 0.6931472, %v719_v34 }
 0x301   :  { %v512_v39 = vmul.f32 0.6931472, %v721_v35 }
 0x302   :  { %v520_v42 = vadd.f32 %v514_v37, %v488_v36 }
 0x303   :  { %v723_v43 = vpop.eup %722  ;;  %v519_v44 = vadd.f32 %v512_v39, %v487_v38 }
 0x304   :  { %v725_v45 = vpop.eup %724  ;;  %v548_v46 = vmul.f32 %v535_v41, %v520_v42  ;;  %v518_v48 = vmul.f32 0.6931472, %v723_v43 }
 0x305   :  { %v547_v49 = vmul.f32 %v530_v40, %v519_v44  ;;  %v516_v51 = vmul.f32 0.6931472, %v725_v45 }
 0x306   :  { %v553_v52 = vsel %vm551_vm2, %v548_v46, 0.0  ;;  %v522_v53 = vadd.f32 %v518_v48, %v490_v47 }
 0x307   :  { %v552_v54 = vsel %vm551_vm2, %v547_v49, 0.0  ;;  %v521_v55 = vadd.f32 %v516_v51, %v489_v50 }
 0x308   :  { %v554_v58 = vadd.f32 %v553_v52, %v552_v54  ;;  %v550_v59 = vmul.f32 %v545_v57, %v522_v53 }
 0x309   :  { %v549_v60 = vmul.f32 %v540_v56, %v521_v55 }
 0x30a   :  { %v557_v63 = vsel %vm551_vm2, %v550_v59, 0.0 }
 0x30b   :  { %v555_v61 = vsel %vm551_vm2, %v549_v60, 0.0 }
 0x30c   :  { %v556_v62 = vadd.f32 %v555_v61, %v554_v58 }
 0x30e   :  { %v558_v0 = vadd.f32 %v557_v63, %v556_v62 }
 0x310   :  { %v559_v1 = vrot.slane %v558_v0, 4 }
 0x312   :  { %v560_v2 = vadd.f32 %v559_v1, %v558_v0 }
 0x314   :  { %v561_v3 = vrot.slane %v560_v2, 2 }
 0x316   :  { %v562_v4 = vadd.f32 %v561_v3, %v560_v2 }
 0x318   :  { %v563_v5 = vrot.slane %v562_v4, 1 }
 0x31a   :  { %v564_v7 = vadd.f32 %v563_v5, %v562_v4 }
 0x31c   :  { %v567_v8 = vadd.f32 %v566_v6, %v564_v7 }
 0x31e   :  { %v568_v9 = vmul.f32 0.5, %v567_v8 }
 0x320   :  { %726 = vtanh.f32 %v568_v9 }
 0x32a   :  { %v727_v10 = vpop.eup %726 }
 0x32b   :  { %v570_v11 = vmul.f32 0.5, %v727_v10 }
 0x32d   :  { %v571_v12 = vadd.f32 0.5, %v570_v11 }
 0x32f   :  { %573 = vst.msk [vmem:[#allocation3] sm:$0x1] %vm572_vm3, %v571_v12 }
 0x330   :  { %739 = shalt.err (!%p736_p4)
}
 0x331   :  { %s740_s19 = scalar_lea.hbm %s933_s9, 16 }
 0x332   :  { %p741_p5 = scmp.ne.s32.totalorder %s933_s9, %s740_s19  ;;  %p744_p6 = scmp.lt.u32.totalorder %s740_s19, %s933_s9 }
 0x334   :  { %p746_p7 = pnand %p744_p6, %p741_p5 }
 0x336   :  { %749 = shalt.err (!%p746_p7)
}
 0x337   :  { %583 = dma.vmem_to_hbm [thread:$0]  %s581_s0, 16, %s933_s9, [#allocation4]  }
 0x338   :  { %750 = dma.done.wait [#allocation4], 16  }
 0x339   :  { %751 = vsyncadd [#allocation4], 4294967280 }
 0x33a   :  { %587 = vsyncpa [#allocation4], 1 }

</bundles_post_ra>
